<compile_context>
chip_gen: v5e
topology: v5e:2x2
jax: 0.10.0
libtpu: 0.0.40
codegen_flags: <defaults>
</compile_context>

<pallas_src>
import math

import jax
import jax.numpy as jnp
from jax.experimental import pallas as pl
from jax.experimental.pallas import tpu as pltpu


def _round_up(v, m):
    return (v + m - 1) // m * m


# ---------------------------------------------------------------------------
# Pallas kernel: one M-tile of flattened patches -> embeddings (matmul + bias)
# ---------------------------------------------------------------------------
def patch_embed_kernel(p_ref, w_ref, b_ref, o_ref):
    # p_ref: (tm, Kp)  bf16 patch rows for this grid step
    # w_ref: (Kp, E)   bf16 projection weight (VMEM-resident across steps)
    # b_ref: (1, E)    f32 projection bias    (VMEM-resident across steps)
    # o_ref: (tm, E)   f32 output embeddings
    acc = jnp.dot(p_ref[...], w_ref[...], preferred_element_type=jnp.float32)
    o_ref[...] = (acc + b_ref[...]).astype(o_ref.dtype)


def patch_embed_forward(x, weight, bias, patch_size):
    """x: (B, C, H, W), weight: (E, C, ph, pw), bias: (E,) -> (B, NP, E)."""
    B, C, H, W = x.shape
    ph, pw = patch_size
    assert H % ph == 0 and W % pw == 0
    gh, gw = H // ph, W // pw
    NP = gh * gw
    E = weight.shape[0]
    K = C * ph * pw

    # ---- im2col in the wrapper (single fused reshape/transpose), bf16 ------
    # Flattening order (c, i, j) matches Conv2d's weight.reshape(E, K) layout.
    M = B * NP
    patches = x.astype(jnp.bfloat16).reshape(B, C, gh, ph, gw, pw)
    patches = patches.transpose(0, 2, 4, 1, 3, 5).reshape(M, K)

    # ---- pad K to a clean MXU depth and M to the row-tile ------------------
    K_pad = max(128, _round_up(K, 128))           # 147 -> 256

    if M >= 1024:
        tm = 512
    elif M >= 16:
        # at least 2 grid steps so v7x's two TensorCores both get work
        tm = max(8, _round_up(pl.cdiv(M, 2), 8))
    else:
        tm = _round_up(max(M, 1), 8)
    M_pad = _round_up(M, tm)

    if (M_pad != M) or (K_pad != K):
        patches = jnp.pad(patches, ((0, M_pad - M), (0, K_pad - K)))

    w_t = weight.reshape(E, K).T.astype(jnp.bfloat16)        # (K, E)
    if K_pad != K:
        w_t = jnp.pad(w_t, ((0, K_pad - K), (0, 0)))          # zeros: no effect
    b = bias.reshape(1, E).astype(jnp.float32)                 # (1, E)

    flops = 2 * M_pad * K_pad * E
    bytes_accessed = (M_pad * K_pad * 2      # bf16 patches read
                      + K_pad * E * 2        # bf16 weight read
                      + E * 4                # f32 bias read
                      + M_pad * E * 4)       # f32 output write

    out = pl.pallas_call(
        patch_embed_kernel,
        out_shape=jax.ShapeDtypeStruct((M_pad, E), jnp.float32),
        grid_spec=pltpu.PrefetchScalarGridSpec(
            num_scalar_prefetch=0,
            grid=(M_pad // tm,),
            in_specs=[
                # M-tile of flattened patch rows
                pl.BlockSpec((tm, K_pad), lambda m: (m, 0)),
                # weight / bias: constant index_map -> stay VMEM-resident
                pl.BlockSpec((K_pad, E), lambda m: (0, 0)),
                pl.BlockSpec((1, E), lambda m: (0, 0)),
            ],
            out_specs=pl.BlockSpec((tm, E), lambda m: (m, 0)),
        ),
        compiler_params=pltpu.CompilerParams(
            dimension_semantics=("parallel",)),
        cost_estimate=pl.CostEstimate(flops=flops, transcendentals=0,
                                      bytes_accessed=bytes_accessed),
    )(patches, w_t, b)

    out = out[:M].reshape(B, NP, E)
    # norm_layer defaults to None -> nn.Identity, so no post-norm here.
    # TODO(synk): optional norm_layer (LayerNorm over embed_dim) not implemented.
    return out


# ---------------------------------------------------------------------------
# Pure-JAX reference (actual strided conv, f32) for correctness checking.
# ---------------------------------------------------------------------------
def patch_embed_ref(x, weight, bias, patch_size):
    out = jax.lax.conv_general_dilated(
        x.astype(jnp.float32), weight.astype(jnp.float32),
        window_strides=patch_size, padding="VALID",
        dimension_numbers=("NCHW", "OIHW", "NCHW"))        # (B, E, gh, gw)
    out = out + bias.reshape(1, -1, 1, 1)
    B, E, gh, gw = out.shape
    return out.reshape(B, E, gh * gw).transpose(0, 2, 1)   # (B, NP, E)


if __name__ == "__main__":
    # Module asserts num_patches == 144: img_size=84, patch_size=7 -> 12*12.
    img_size = 84
    patch_size = (7, 7)
    in_chans = 3
    embed_dim = 64
    batch = 2

    key = jax.random.PRNGKey(0)
    kx, kw, kb = jax.random.split(key, 3)

    x = jax.random.normal(
        kx, (batch, in_chans, img_size, img_size), dtype=jnp.float32)

    # Conv2d default init: kaiming-uniform-style bounds of +/- 1/sqrt(fan_in)
    fan_in = in_chans * patch_size[0] * patch_size[1]
    bound = 1.0 / math.sqrt(fan_in)
    weight = jax.random.uniform(
        kw, (embed_dim, in_chans, patch_size[0], patch_size[1]),
        dtype=jnp.float32, minval=-bound, maxval=bound)
    bias = jax.random.uniform(
        kb, (embed_dim,), dtype=jnp.float32, minval=-bound, maxval=bound)

    out = patch_embed_forward(x, weight, bias, patch_size)
    out = jax.block_until_ready(out)

    ref = patch_embed_ref(x, weight, bias, patch_size)
    assert out.shape == (batch, 144, embed_dim), out.shape
    # bf16 matmul inputs (f32 accumulation) vs. f32 conv reference:
    # tolerance relaxed accordingly (per perf-review note).
    assert jnp.allclose(out, ref, atol=5e-2, rtol=5e-2), (
        float(jnp.max(jnp.abs(out - ref))))

    print("KERNEL_OK")
</pallas_src>

<mosaic_0001>
module attributes {stable_mosaic.version = 11 : i64} {
  func.func @patch_embed_kernel(%arg0: i32, %arg1: memref<144x256xbf16, #tpu.memory_space<vmem>>, %arg2: memref<256x64xbf16, #tpu.memory_space<vmem>>, %arg3: memref<1x64xf32, #tpu.memory_space<vmem>>, %arg4: memref<144x64xf32, #tpu.memory_space<vmem>>) attributes {dimension_semantics = [#tpu.dimension_semantics<parallel>], iteration_bounds = array<i64: 2>, scalar_prefetch = 0 : i64, scratch_operands = 0 : i64, tpu.core_type = #tpu.core_type<tc>, window_params = [{transform_indices = @transform_0, window_bounds = array<i64: 144, 256>}, {pipeline_mode = #tpu.pipeline_mode<synchronous>, transform_indices = @transform_1, window_bounds = array<i64: 256, 64>}, {pipeline_mode = #tpu.pipeline_mode<synchronous>, transform_indices = @transform_2, window_bounds = array<i64: 1, 64>}, {transform_indices = @transform_3, window_bounds = array<i64: 144, 64>}]} {
    %c0 = arith.constant 0 : index
    %c0_0 = arith.constant 0 : index
    %0 = vector.load %arg1[%c0, %c0_0] : memref<144x256xbf16, #tpu.memory_space<vmem>>, vector<144x256xbf16>
    %c0_1 = arith.constant 0 : index
    %c0_2 = arith.constant 0 : index
    %1 = vector.load %arg2[%c0_1, %c0_2] : memref<256x64xbf16, #tpu.memory_space<vmem>>, vector<256x64xbf16>
    %cst = arith.constant dense<0.000000e+00> : vector<144x64xf32>
    %2 = tpu.matmul %0, %1, %cst {dimension_numbers = #tpu.dot_dimension_numbers<[1], [0], [0], [1], [0, 0, 1, 1], [], []>} : vector<144x256xbf16>, vector<256x64xbf16>, vector<144x64xf32> -> vector<144x64xf32>
    %c0_3 = arith.constant 0 : index
    %c0_4 = arith.constant 0 : index
    %3 = vector.load %arg3[%c0_3, %c0_4] : memref<1x64xf32, #tpu.memory_space<vmem>>, vector<1x64xf32>
    %4 = vector.broadcast %3 : vector<1x64xf32> to vector<144x64xf32>
    %5 = arith.addf %2, %4 : vector<144x64xf32>
    %c0_5 = arith.constant 0 : index
    %c0_6 = arith.constant 0 : index
    %6 = vector.load %arg4[%c0_5, %c0_6] : memref<144x64xf32, #tpu.memory_space<vmem>>, vector<144x64xf32>
    tpu.vector_store %arg4[%c0_5, %c0_6], %5 {strides = array<i32>} : memref<144x64xf32, #tpu.memory_space<vmem>>, vector<144x64xf32>,
    return
  }
  func.func @transform_0(%arg0: i32) -> (i32, i32) {
    %c0_i32 = arith.constant 0 : i32
    %c0_i32_0 = arith.constant 0 : i32
    return %arg0, %c0_i32 : i32, i32
  }
  func.func @transform_1(%arg0: i32) -> (i32, i32) {
    %c0_i32 = arith.constant 0 : i32
    %c0_i32_0 = arith.constant 0 : i32
    %c0_i32_1 = arith.constant 0 : i32
    return %c0_i32, %c0_i32_0 : i32, i32
  }
  func.func @transform_2(%arg0: i32) -> (i32, i32) {
    %c0_i32 = arith.constant 0 : i32
    %c0_i32_0 = arith.constant 0 : i32
    %c0_i32_1 = arith.constant 0 : i32
    return %c0_i32, %c0_i32_0 : i32, i32
  }
  func.func @transform_3(%arg0: i32) -> (i32, i32) {
    %c0_i32 = arith.constant 0 : i32
    %c0_i32_0 = arith.constant 0 : i32
    return %arg0, %c0_i32 : i32, i32
  }
}

</mosaic_0001>

<bundles_post_ra>
// kernel: tpu_custom_call.1
= control target key start
LH: loop header
LB: loop body
LE: loop exit
PB: predicated region body
PF: predicated region fallthrough
CT: control target
= control target key end

     0   :  { %8 = vsyncpa [#allocation3], 0  ;;  %s1199_s0 = inlined_call_operand.hbm [shape: bf16[288,256], index: 0, kind: input, shape index: {}]   ;;  %s1200_s1 = inlined_call_operand.vmem [shape: bf16[256,64], index: 1, kind: input, shape index: {}]   ;;  %s1201_s2 = inlined_call_operand.vmem [shape: f32[1,64], index: 2, kind: input, shape index: {}]   ;;  %s1202_s3 = inlined_call_operand.vmem [shape: f32[288,64], index: 3, kind: output, shape index: {}]  }
   0x1   :  { %10 = vsyncpa [#allocation3 + $0x1], 0  ;;  %s961_s12 = smov 0   ;;  %s963_s13 = smov 0  }
   0x2   :  { %s965_s14 = smov 0   ;;  %s967_s15 = smov 0  }
   0x3 LB: > { %s630_s16 = sadd.s32 4294967295, %s937_s15   ;;  %s981_s17 = sadd.s32 1, %s937_s15   ;;  %s937_s15 = sphi %s967_s15, %s1208_s15   ;;  %s933_s14 = sphi %s965_s14, %s1207_s14   ;;  %s929_s13 = sphi %s963_s13, %s1206_s13   ;;  %s925_s12 = sphi %s961_s12, %s1205_s12  }
   0x4   : > { %s20_s18 = ssub.s32 %s937_s15, %s981_s17  ;;  %s23_s19 = sadd.s32 1, %s933_s14 }
   0x5   : > { %p21_p0 = scmp.eq.s32.totalorder %s20_s18, 0  ;;  %p30_p1 = scmp.ne.s32.totalorder %s933_s14, %s929_s13 }
   0x6   : > { %p31_p2 = scmp.eq.s32.totalorder %s937_s15, 0  ;;  %p36_p3 = scmp.ne.s32.totalorder %s929_s13, %s925_s12 }
   0x7   : > { %s991_s20 = scalar_select %p21_p0, %s933_s14, %s23_s19  }
   0x8   : > { %p32_p4 = por %p31_p2, %p30_p1  ;;  %p37_p5 = scmp.eq.s32.totalorder %s630_s16, 0 }
   0x9   : > { %p837_p6 = scmp.lt.s32.totalorder %s937_s15, 2  ;;  %s134_s22 = sand.u32 1, %s933_s14  }
   0xa   : > { %p996_p7 = por %p37_p5, %p36_p3  ;;  %s829_s23 = smul.u32 144, %s134_s22 }
   0xb   : > { %s812_s24 = smul.u32 144, %s937_s15  ;;  %p1002_p8 = pnand %p837_p6, %p32_p4 }
   0xc   : > { %s138_s29 = scalar_lea.vmem [#allocation2], %s829_s23  ;;  %p636_p9 = scmp.ge.s32.totalorder %s937_s15, 1 }
   0xd   : > { %s144_s28 = scalar_lea.hbm %s1199_s0, %s812_s24  ;;  %s147_s30 = sshll.u32 %s138_s29, 4  ;;  %s148_s30 = int_to_ptr.vmem [resolvable:$true] %s147_s30 }
   0xe   : > { %s145_s4 = sshll.u32 %s144_s28, 4  ;;  %s135_s5 = scalar_lea.sflag [#allocation3], %s134_s22  ;;  %s146_s4 = int_to_ptr.hbm [resolvable:$true] %s145_s4 }
   0xf   : > { %s873_s6 = sshra.s32 %s146_s4, 4  ;;  %p877_p11 = pneg %p1002_p8  ;;  %s874_s6 = int_to_ptr.hbm [resolvable:$true] %s873_s6 }
  0x10   : > { %s875_s7 = scalar_lea.hbm %s874_s6, 144  ;;  %s880_s10 = scalar_lea.hbm %s1199_s0, 288 }
  0x11   : > { %p876_p10 = scmp.ne.s32.totalorder %s874_s6, %s875_s7  ;;  %p881_p0 = scmp.lt.s32.totalorder %s874_s6, %s1199_s0 }
  0x12   : > { %p882_p1 = scmp.lt.s32.totalorder %s880_s10, %s875_s7 }
  0x13   : > { %p878_p12 = pnand %p877_p11, %p876_p10 }
  0x14   : > { %p883_p2 = por %p882_p1, %p881_p0 }
  0x15   : > { %p879_p13 = pneg %p878_p12 }
  0x17   : > { %p884_p3 = pnand %p883_p2, %p879_p13 }
  0x19   : > { %887 = shalt.err (!%p884_p3)
}
  0x1a   : > { %s939_s18 = smov 128   ;;  %s940_s19 = smov 8  }
  0x1b   : > { %836 = dma.hbm_to_vmem [thread:$0]  (!%p1002_p8), %s146_s4, 2304, %s148_s30, %s135_s5, %s939_s18, %s939_s18, %s940_s19  }
  0x1c   : > { %p155_p4 = scmp.lt.s32.totalorder %s937_s15, 3 }
  0x1e   : > { %p156_p5 = pnand %p636_p9, %p155_p4 }
  0x1f   : > { %s161_s22 = sand.u32 (!%p156_p5), 1, %s929_s13  }
  0x20   : > { %159 = sbr.rel (%p156_p5) target bundleno = 279 (0x117), region = 32  ;;  %s162_s24 = scalar_lea.sflag (!%p156_p5), [#allocation3], %s161_s22 }
  0x21   : > { %s830_s23 = smul.u32 (!%p156_p5), 144, %s161_s22 }
  0x23   : > { %s1024_s26 = scalar_lea.vmem (!%p156_p5), [#allocation2], %s830_s23 }
  0x25   : > { %920 = dma.done.wait (%p996_p7), %s162_s24, 2304  }
  0x26   : > { %922 = vsyncadd (%p996_p7), %s162_s24, 4294964992  ;;  %v803_v0 = vld [vmem:[%s1200_s1 + $0x38] sm:$0xff]  ;;  %v802_v2 = vld [vmem:[%s1200_s1 + $0x30] sm:$0xff]  ;;  %s190_s10 = smul.u32 18, %s630_s16  ;;  %vm544_vm0 = vcmask 523264  }
  0x27   : > { %v811_v1 = vld [vmem:[%s1200_s1 + $0x78] sm:$0xff]  ;;  %436 = vmatpush.bf16.msra.mxu0 %v803_v0  ;;  %813 = vmatpush.bf16.msra.mxu2 %v803_v0  ;;  %v810_v3 = vld [vmem:[%s1200_s1 + $0x70] sm:$0xff]  ;;  %v801_v4 = vld [vmem:[%s1200_s1 + $0x28] sm:$0xff] }
  0x28   : > { %490 = vmatpush.bf16.msra.mxu1 %v811_v1  ;;  %821 = vmatpush.bf16.msra.mxu3 %v811_v1  ;;  %v809_v5 = vld [vmem:[%s1200_s1 + $0x68] sm:$0xff]  ;;  %v800_v6 = vld [vmem:[%s1200_s1 + $0x20] sm:$0xff]  ;;  %v799_v8 = vld [vmem:[%s1200_s1 + $0x18] sm:$0xff]  ;;  %p191_p6 = scmp.lt.s32.totalorder %s190_s10, 35 }
  0x29   : > { %v808_v7 = vld [vmem:[%s1200_s1 + $0x60] sm:$0xff]  ;;  %v807_v9 = vld [vmem:[%s1200_s1 + $0x58] sm:$0xff]  ;;  %v798_v10 = vld [vmem:[%s1200_s1 + $0x10] sm:$0xff] }
  0x2a   : > { %v806_v11 = vld [vmem:[%s1200_s1 + $0x50] sm:$0xff]  ;;  %v797_v12 = vld [vmem:[%s1200_s1 + $0x8] sm:$0xff]  ;;  %v796_v14 = vld [vmem:[%s1200_s1] sm:$0xff]  ;;  %s1210_s10 = smov (!%p191_p6, %s190_s10), 35 }
  0x2b   : > { %437 = vmatpush.bf16.msra.mxu0 %v802_v2  ;;  %814 = vmatpush.bf16.msra.mxu2 %v802_v2  ;;  %v805_v13 = vld [vmem:[%s1200_s1 + $0x48] sm:$0xff]  ;;  %v804_v15 = vld [vmem:[%s1200_s1 + $0x40] sm:$0xff]  ;;  %s637_s18 = sshll.u32 %s1210_s10, 3 }
  0x2c   : > { %491 = vmatpush.bf16.msra.mxu1 %v810_v3  ;;  %822 = vmatpush.bf16.msra.mxu3 %v810_v3  ;;  %v640_v16 = vld [vmem:[%s1024_s26] sm:$0xf]  ;;  %v779_v17 = vld [vmem:[%s1024_s26 + $0x4] sm:$0xf0]  ;;  %v778_v20 = vld [vmem:[%s1024_s26 + $0x4] sm:$0xf]  ;;  %s1125_s22 = scalar_lea.vmem %s1202_s3, %s637_s18 }
  0x2d   : > { %v672_v18 = vld [vmem:[%s1024_s26 + $0x40] sm:$0xf]  ;;  %v787_v19 = vld [vmem:[%s1024_s26 + $0x44] sm:$0xf0]  ;;  %v642_v21 = vld [vmem:[%s1024_s26 + $0x8] sm:$0xf0]  ;;  %v641_v24 = vor.u32 %v779_v17, %v640_v16 }
  0x2e   : > { %v788_v22 = vld [vmem:[%s1024_s26 + $0x54] sm:$0xf]  ;;  %v682_v23 = vld [vmem:[%s1024_s26 + $0x58] sm:$0xf0]  ;;  %v673_v25 = vor.u32 %v787_v19, %v672_v18  ;;  %v645_v26 = vor.u32 %v778_v20, %v642_v21  ;;  %v648_v28 = vld [vmem:[%s1024_s26 + $0x10] sm:$0xf] }
  0x2f   : > { %438 = vmatpush.bf16.msra.mxu0 %v801_v4  ;;  %815 = vmatpush.bf16.msra.mxu2 %v801_v4  ;;  %v685_v27 = vor.u32 %v788_v22, %v682_v23  ;;  %v781_v29 = vld [vmem:[%s1024_s26 + $0x14] sm:$0xf0]  ;;  %v680_v30 = vld [vmem:[%s1024_s26 + $0x50] sm:$0xf]  ;;  %v780_v32 = vld [vmem:[%s1024_s26 + $0x14] sm:$0xf] }
  0x30   : > { %492 = vmatpush.bf16.msra.mxu1 %v809_v5  ;;  %823 = vmatpush.bf16.msra.mxu3 %v809_v5  ;;  %v789_v31 = vld [vmem:[%s1024_s26 + $0x54] sm:$0xf0]  ;;  %v650_v33 = vld [vmem:[%s1024_s26 + $0x18] sm:$0xf0]  ;;  %v790_v34 = vld [vmem:[%s1024_s26 + $0x64] sm:$0xf]  ;;  %v649_v36 = vor.u32 %v781_v29, %v648_v28 }
  0x31   : > { %v690_v35 = vld [vmem:[%s1024_s26 + $0x68] sm:$0xf0]  ;;  %v681_v37 = vor.u32 %v789_v31, %v680_v30  ;;  %v653_v38 = vor.u32 %v780_v32, %v650_v33  ;;  %v656_v40 = vld [vmem:[%s1024_s26 + $0x20] sm:$0xf]  ;;  %v783_v41 = vld [vmem:[%s1024_s26 + $0x24] sm:$0xf0] }
  0x32   : > { %v693_v39 = vor.u32 %v790_v34, %v690_v35  ;;  %v688_v42 = vld [vmem:[%s1024_s26 + $0x60] sm:$0xf]  ;;  %v791_v43 = vld [vmem:[%s1024_s26 + $0x64] sm:$0xf0]  ;;  %v782_v44 = vld [vmem:[%s1024_s26 + $0x24] sm:$0xf]  ;;  %v657_v48 = vor.u32 %v783_v41, %v656_v40 }
  0x33   : > { %439 = vmatpush.bf16.msra.mxu0 %v800_v6  ;;  %816 = vmatpush.bf16.msra.mxu2 %v800_v6  ;;  %v658_v45 = vld [vmem:[%s1024_s26 + $0x28] sm:$0xf0]  ;;  %v792_v46 = vld [vmem:[%s1024_s26 + $0x74] sm:$0xf]  ;;  %v698_v47 = vld [vmem:[%s1024_s26 + $0x78] sm:$0xf0]  ;;  %v689_v49 = vor.u32 %v791_v43, %v688_v42 }
  0x34   : > { %493 = vmatpush.bf16.msra.mxu1 %v808_v7  ;;  %824 = vmatpush.bf16.msra.mxu3 %v808_v7  ;;  %v661_v50 = vor.u32 %v782_v44, %v658_v45  ;;  %v701_v51 = vor.u32 %v792_v46, %v698_v47  ;;  %v664_v52 = vld [vmem:[%s1024_s26 + $0x30] sm:$0xf]  ;;  %v785_v53 = vld [vmem:[%s1024_s26 + $0x34] sm:$0xf0]  ;;  %v784_v56 = vld [vmem:[%s1024_s26 + $0x34] sm:$0xf] }
  0x35   : > { %v696_v54 = vld [vmem:[%s1024_s26 + $0x70] sm:$0xf]  ;;  %v793_v55 = vld [vmem:[%s1024_s26 + $0x74] sm:$0xf0]  ;;  %v666_v57 = vld [vmem:[%s1024_s26 + $0x38] sm:$0xf0]  ;;  %v665_v60 = vor.u32 %v785_v53, %v664_v52 }
  0x36   : > { %v794_v58 = vld [vmem:[%s1024_s26 + $0x84] sm:$0xf]  ;;  %v706_v59 = vld [vmem:[%s1024_s26 + $0x88] sm:$0xf0]  ;;  %v697_v61 = vor.u32 %v793_v55, %v696_v54  ;;  %v669_v62 = vor.u32 %v784_v56, %v666_v57  ;;  %v704_v0 = vld [vmem:[%s1024_s26 + $0x80] sm:$0xf] }
  0x37   : > { %440 = vmatpush.bf16.msra.mxu0 %v799_v8  ;;  %817 = vmatpush.bf16.msra.mxu2 %v799_v8  ;;  %v709_v63 = vor.u32 %v794_v58, %v706_v59  ;;  %v795_v1 = vld [vmem:[%s1024_s26 + $0x84] sm:$0xf0]  ;;  %v786_v2 = vld [vmem:[%s1024_s26 + $0x44] sm:$0xf]  ;;  %v674_v3 = vld [vmem:[%s1024_s26 + $0x48] sm:$0xf0] }
  0x38   : > { %494 = vmatpush.bf16.msra.mxu1 %v807_v9  ;;  %825 = vmatpush.bf16.msra.mxu3 %v807_v9  ;;  %v705_v4 = vor.u32 %v795_v1, %v704_v0  ;;  %v677_v5 = vor.u32 %v786_v2, %v674_v3  ;;  %v1119_v6 = vld [vmem:[%s1201_s2] ss:$0 sm:$0xff] }
  0x3b   : > { %441 = vmatpush.bf16.msra.mxu0 %v798_v10  ;;  %818 = vmatpush.bf16.msra.mxu2 %v798_v10 }
  0x3c   : > { %495 = vmatpush.bf16.msra.mxu1 %v806_v11  ;;  %826 = vmatpush.bf16.msra.mxu3 %v806_v11 }
  0x3f   : > { %442 = vmatpush.bf16.msra.mxu0 %v797_v12  ;;  %819 = vmatpush.bf16.msra.mxu2 %v797_v12 }
  0x40   : > { %496 = vmatpush.bf16.msra.mxu1 %v805_v13  ;;  %827 = vmatpush.bf16.msra.mxu3 %v805_v13 }
  0x43   : > { %443 = vmatpush.bf16.msra.mxu0 %v796_v14  ;;  %820 = vmatpush.bf16.msra.mxu2 %v796_v14 }
  0x44   : > { %497 = vmatpush.bf16.msra.mxu1 %v804_v15  ;;  %828 = vmatpush.bf16.msra.mxu3 %v804_v15 }
  0x46   : > { %444 = vmatmul.bf16.vlgmr.msra.gmra.mxu0 %v641_v24  ;;  %464 = vmatmul.bf16.vlgmr.msra.gmra.mxu2 %v673_v25 }
  0x47   : > { %498 = vmatmul.bf16.vlgmr.msra.gmra.mxu1 %v645_v26  ;;  %523 = vmatmul.bf16.vlgmr.msra.gmra.mxu3 %v685_v27 }
  0x56   : > { %449 = vmatmul.bf16.gmra.mxu0 %v649_v36  ;;  %469 = vmatmul.bf16.gmra.mxu2 %v681_v37 }
  0x57   : > { %503 = vmatmul.bf16.gmra.mxu1 %v653_v38  ;;  %528 = vmatmul.bf16.gmra.mxu3 %v693_v39 }
  0x66   : > { %454 = vmatmul.bf16.gmra.mxu0 %v657_v48  ;;  %474 = vmatmul.bf16.gmra.mxu2 %v689_v49 }
  0x67   : > { %508 = vmatmul.bf16.gmra.mxu1 %v661_v50  ;;  %533 = vmatmul.bf16.gmra.mxu3 %v701_v51 }
  0x76   : > { %459 = vmatmul.bf16.gmra.mxu0 %v665_v60  ;;  %479 = vmatmul.bf16.gmra.mxu2 %v697_v61 }
  0x77   : > { %513 = vmatmul.bf16.gmra.mxu1 %v669_v62  ;;  %538 = vmatmul.bf16.gmra.mxu3 %v709_v63 }
  0x86   : > { %484 = vmatmul.bf16.gmra.mxu2 %v705_v4 }
  0x87   : > { %518 = vmatmul.bf16.gmra.mxu1 %v677_v5 }
  0xc3   : > { %v445_v7 = vpop.f32.mrf.mxu0 }
  0xc4   : > { %v446_v8 = vadd.f32 %v1119_v6, %v445_v7  ;;  %v499_v9 = vpop.f32.mrf.mxu1 }
  0xc6   : > { %v500_v10 = vadd.f32 %v499_v9, %v446_v8 }
  0xc8   : > { %545 = vst.msk [vmem:[%s1125_s22] sm:$0xff] %vm544_vm0, %v500_v10 }
  0xc9   : > { %v1129_v11 = vpop.f32.mrf.mxu2 }
  0xca   : > { %v524_v15 = vpop.f32.mrf.mxu3  ;;  %v466_v0 = vadd.f32 %v1119_v6, %v1129_v11 }
  0xcb   : > { %v447_v12 = vpop.f32.mrf.mxu0 }
  0xcc   : > { %v448_v13 = vadd.f32 %v1119_v6, %v447_v12  ;;  %v501_v14 = vpop.f32.mrf.mxu1 }
  0xce   : > { %v502_v16 = vadd.f32 %v501_v14, %v448_v13 }
  0xd0   : > { %546 = vst.msk [vmem:[%s1125_s22 + $0x8] sm:$0xff] %vm544_vm0, %v502_v16 }
  0xd1   : > { %v1134_v17 = vpop.f32.mrf.mxu2 }
  0xd2   : > { %v526_v22 = vpop.f32.mrf.mxu3  ;;  %v468_v8 = vadd.f32 %v1119_v6, %v1134_v17 }
  0xd3   : > { %v450_v18 = vpop.f32.mrf.mxu0 }
  0xd4   : > { %v451_v19 = vadd.f32 %v1119_v6, %v450_v18  ;;  %v504_v20 = vpop.f32.mrf.mxu1 }
  0xd6   : > { %v505_v21 = vadd.f32 %v504_v20, %v451_v19 }
  0xd8   : > { %547 = vst.msk [vmem:[%s1125_s22 + $0x10] sm:$0xff] %vm544_vm0, %v505_v21 }
  0xd9   : > { %v470_v23 = vpop.f32.mrf.mxu2 }
  0xda   : > { %v471_v24 = vadd.f32 %v1119_v6, %v470_v23  ;;  %v529_v31 = vpop.f32.mrf.mxu3 }
  0xdb   : > { %v452_v25 = vpop.f32.mrf.mxu0 }
  0xdc   : > { %v525_v26 = vadd.f32 %v524_v15, %v471_v24  ;;  %v453_v27 = vadd.f32 %v1119_v6, %v452_v25  ;;  %v506_v28 = vpop.f32.mrf.mxu1 }
  0xde   : > { %555 = vst.msk [vmem:[%s1125_s22 + $0x50] sm:$0xff] %vm544_vm0, %v525_v26  ;;  %v507_v29 = vadd.f32 %v506_v28, %v453_v27 }
  0xe0   : > { %548 = vst.msk [vmem:[%s1125_s22 + $0x18] sm:$0xff] %vm544_vm0, %v507_v29 }
  0xe1   : > { %v472_v30 = vpop.f32.mrf.mxu2 }
  0xe2   : > { %v473_v32 = vadd.f32 %v1119_v6, %v472_v30  ;;  %v531_v41 = vpop.f32.mrf.mxu3 }
  0xe3   : > { %v455_v33 = vpop.f32.mrf.mxu0 }
  0xe4   : > { %v527_v34 = vadd.f32 %v526_v22, %v473_v32  ;;  %v456_v35 = vadd.f32 %v1119_v6, %v455_v33  ;;  %v509_v36 = vpop.f32.mrf.mxu1 }
  0xe6   : > { %556 = vst.msk [vmem:[%s1125_s22 + $0x58] sm:$0xff] %vm544_vm0, %v527_v34  ;;  %v510_v37 = vadd.f32 %v509_v36, %v456_v35 }
  0xe8   : > { %549 = vst.msk [vmem:[%s1125_s22 + $0x20] sm:$0xff] %vm544_vm0, %v510_v37 }
  0xe9   : > { %v475_v38 = vpop.f32.mrf.mxu2 }
  0xea   : > { %v476_v39 = vadd.f32 %v1119_v6, %v475_v38  ;;  %v534_v52 = vpop.f32.mrf.mxu3 }
  0xeb   : > { %v457_v40 = vpop.f32.mrf.mxu0 }
  0xec   : > { %v530_v42 = vadd.f32 %v529_v31, %v476_v39  ;;  %v458_v43 = vadd.f32 %v1119_v6, %v457_v40  ;;  %v511_v44 = vpop.f32.mrf.mxu1 }
  0xee   : > { %557 = vst.msk [vmem:[%s1125_s22 + $0x60] sm:$0xff] %vm544_vm0, %v530_v42  ;;  %v512_v45 = vadd.f32 %v511_v44, %v458_v43 }
  0xf0   : > { %550 = vst.msk [vmem:[%s1125_s22 + $0x28] sm:$0xff] %vm544_vm0, %v512_v45 }
  0xf1   : > { %v477_v46 = vpop.f32.mrf.mxu2 }
  0xf2   : > { %v478_v47 = vadd.f32 %v1119_v6, %v477_v46  ;;  %v536_v61 = vpop.f32.mrf.mxu3 }
  0xf3   : > { %v460_v48 = vpop.f32.mrf.mxu0 }
  0xf4   : > { %v532_v49 = vadd.f32 %v531_v41, %v478_v47  ;;  %v461_v50 = vadd.f32 %v1119_v6, %v460_v48  ;;  %v514_v51 = vpop.f32.mrf.mxu1 }
  0xf6   : > { %558 = vst.msk [vmem:[%s1125_s22 + $0x68] sm:$0xff] %vm544_vm0, %v532_v49  ;;  %v515_v53 = vadd.f32 %v514_v51, %v461_v50 }
  0xf8   : > { %551 = vst.msk [vmem:[%s1125_s22 + $0x30] sm:$0xff] %vm544_vm0, %v515_v53 }
  0xf9   : > { %v480_v54 = vpop.f32.mrf.mxu2 }
  0xfa   : > { %v481_v55 = vadd.f32 %v1119_v6, %v480_v54  ;;  %v539_v4 = vpop.f32.mrf.mxu3 }
  0xfb   : > { %v462_v56 = vpop.f32.mrf.mxu0 }
  0xfc   : > { %v535_v57 = vadd.f32 %v534_v52, %v481_v55  ;;  %v463_v58 = vadd.f32 %v1119_v6, %v462_v56  ;;  %v516_v59 = vpop.f32.mrf.mxu1 }
  0xfe   : > { %559 = vst.msk [vmem:[%s1125_s22 + $0x70] sm:$0xff] %vm544_vm0, %v535_v57  ;;  %v517_v60 = vadd.f32 %v516_v59, %v463_v58 }
 0x100   : > { %552 = vst.msk [vmem:[%s1125_s22 + $0x38] sm:$0xff] %vm544_vm0, %v517_v60 }
 0x101   : > { %v482_v62 = vpop.f32.mrf.mxu2 }
 0x102   : > { %v483_v63 = vadd.f32 %v1119_v6, %v482_v62  ;;  %v541_v14 = vpop.f32.mrf.mxu3 }
 0x104   : > { %v537_v1 = vadd.f32 %v536_v61, %v483_v63  ;;  %v519_v2 = vpop.f32.mrf.mxu1 }
 0x105   : > { %v520_v3 = vadd.f32 %v519_v2, %v466_v0 }
 0x106   : > { %560 = vst.msk [vmem:[%s1125_s22 + $0x78] sm:$0xff] %vm544_vm0, %v537_v1 }
 0x107   : > { %553 = vst.msk [vmem:[%s1125_s22 + $0x40] sm:$0xff] %vm544_vm0, %v520_v3 }
 0x109   : > { %v485_v5 = vpop.f32.mrf.mxu2 }
 0x10a   : > { %v486_v7 = vadd.f32 %v1119_v6, %v485_v5 }
 0x10c   : > { %v540_v9 = vadd.f32 %v539_v4, %v486_v7  ;;  %v521_v10 = vpop.f32.mrf.mxu1 }
 0x10d   : > { %v522_v12 = vadd.f32 %v521_v10, %v468_v8 }
 0x10e   : > { %561 = vst.msk [vmem:[%s1125_s22 + $0x80] sm:$0xff] %vm544_vm0, %v540_v9 }
 0x10f   : > { %554 = vst.msk [vmem:[%s1125_s22 + $0x48] sm:$0xff] %vm544_vm0, %v522_v12 }
 0x111   : > { %v487_v11 = vpop.f32.mrf.mxu2 }
 0x112   : > { %v488_v13 = vadd.f32 %v1119_v6, %v487_v11 }
 0x114   : > { %v542_v15 = vadd.f32 %v541_v14, %v488_v13 }
 0x116   : > { %562 = vst.msk [vmem:[%s1125_s22 + $0x88] sm:$0xff] %vm544_vm0, %v542_v15 }
 0x117 PF: > { %p13_p7 = scmp.ge.s32.totalorder %s981_s17, 4   ;;  %s1205_s12 = smov %s929_s13 }
 0x118   : > { %s1206_s13 = smov %s933_s14  ;;  %s1207_s14 = smov %s991_s20 }
 0x119   : > { %s1208_s15 = smov %s981_s17  ;;  %15 = sbr.rel (!%p13_p7) target bundleno = 3 (0x3), region = 72 }
 0x11e   :  { %585 = vsyncpa [#allocation3], 1 }
 0x11f   :  { %587 = vsyncpa [#allocation3 + $0x1], 1 }

</bundles_post_ra>
